<compile_context>
chip_gen: v6e
topology: v6e:2x2x1
jax: 0.10.0
libtpu: 0.0.40
codegen_flags: <defaults>
</compile_context>

<pallas_src>
import functools

import jax
import jax.numpy as jnp
from jax.experimental import pallas as pl
from jax.experimental.pallas import tpu as pltpu

_LANE = 128


def _pad_to(n, m):
    return max(m, ((n + m - 1) // m) * m)


def _mean_agg_kernel(a_ref, c_ref, x_ref, o_ref, *, num_steps, unroll):
    """Run `num_steps` of mean neighborhood aggregation on one feature tile."""
    a = a_ref[...]                                   # (Np, Np) bf16, hoisted out of the loop
    c = jnp.broadcast_to(c_ref[...], x_ref.shape)    # (Np, TD) f32, broadcast once (not per step)

    def one_step(x):
        # bf16 MXU operands, f32 accumulation; row correction on the VPU.
        return jnp.dot(a, x.astype(jnp.bfloat16),
                       preferred_element_type=jnp.float32) * c

    def body(_, x):
        for _ in range(unroll):                      # manual partial unroll
            x = one_step(x)
        return x

    x = x_ref[...]
    n_main = num_steps // unroll
    if n_main > 0:
        x = jax.lax.fori_loop(0, n_main, body, x)
    for _ in range(num_steps % unroll):              # static remainder
        x = one_step(x)
    o_ref[...] = x


def make_mean_agg(N_pad, D_pad, num_steps, td=_LANE, unroll=8):
    """pallas_call running `num_steps` mean-aggregation steps on (N_pad, D_pad) features."""
    assert D_pad % td == 0 and N_pad % _LANE == 0
    kernel = functools.partial(_mean_agg_kernel, num_steps=num_steps, unroll=unroll)

    # Resident bf16 adjacency + correction + double-buffered f32 feature tiles.
    need = 2 * (N_pad * N_pad * 2) + 2 * (N_pad * 4) + 2 * 2 * (N_pad * td * 4) + (4 << 20)
    vmem_limit = int(min(max(need, 32 << 20), 56 << 20))
    # NOTE: for N large enough that the bf16 adjacency cannot stay resident
    # (especially v7x at 64 MiB), switch A to memory_space=pl.ANY and stream
    # row tiles with pltpu.emit_pipeline; not needed at these shapes.

    return pl.pallas_call(
        kernel,
        out_shape=jax.ShapeDtypeStruct((N_pad, D_pad), jnp.float32),
        grid=(D_pad // td,),
        in_specs=[
            pl.BlockSpec((N_pad, N_pad), lambda j: (0, 0)),   # normalized adjacency (bf16, resident)
            pl.BlockSpec((N_pad, 1), lambda j: (0, 0)),       # f32 row correction (resident)
            pl.BlockSpec((N_pad, td), lambda j: (0, j)),      # lane-dense feature tile
        ],
        out_specs=pl.BlockSpec((N_pad, td), lambda j: (0, j)),
        input_output_aliases={2: 0},                  # update features in place
        compiler_params=pltpu.CompilerParams(
            dimension_semantics=("parallel",),        # D-tiles independent -> megacore split
            vmem_limit_bytes=vmem_limit,
        ),
    )


def _prepare(adj, N_pad):
    """Pad + fold mean normalization into the adjacency (bf16) + f32 row correction."""
    N = adj.shape[0]
    adj_p = jnp.zeros((N_pad, N_pad), jnp.float32).at[:N, :N].set(adj.astype(jnp.float32))
    deg = jnp.sum(adj_p, axis=1, keepdims=True)
    # DGL's mean-reduce leaves zero-in-degree nodes unchanged -> self loop.
    # Padding rows also get a self loop, so zero-padded features stay zero.
    adj_p = adj_p + jnp.eye(N_pad, dtype=jnp.float32) * (deg == 0).astype(jnp.float32)
    dinv = 1.0 / jnp.maximum(deg, 1.0)
    a_bf16 = (adj_p * dinv).astype(jnp.bfloat16)
    # Per-row f32 correction so the aggregation operator's row sums are exactly 1
    # (to f32 precision), preventing geometric ||X|| drift from bf16 rounding.
    rowsum = jnp.sum(a_bf16.astype(jnp.float32), axis=1, keepdims=True)
    corr = (1.0 / jnp.maximum(rowsum, 1e-30)).astype(jnp.float32)
    return a_bf16, corr


def gmes_reduce_mean(adj, repre, num_inner=1000, tol=0.1, max_outer=50):
    """Equivalent of GMesReduce.forward(g, 'mean')."""
    N, D = repre.shape
    N_pad = _pad_to(N, _LANE)
    D_pad = _pad_to(D, _LANE)

    a_bf16, corr = _prepare(adj.astype(jnp.float32), N_pad)
    x0 = jnp.zeros((N_pad, D_pad), jnp.float32).at[:N, :D].set(repre.astype(jnp.float32))

    agg = make_mean_agg(N_pad, D_pad, num_inner)

    @jax.jit
    def run(a, c, x):
        def cond(carry):
            _, _, delta, it = carry
            return jnp.logical_and(delta > tol, it < max_outer)

        def body(carry):
            x_cur, prev_ss, _, it = carry
            x_new = agg(a, c, x_cur)                   # 1000 aggregation steps on-chip
            ss = jnp.sum(x_new * x_new)                # convergence stat (wrapper-side)
            return x_new, ss, jnp.abs(prev_ss - ss), it + 1

        ss0 = jnp.sum(x * x)
        x_fin, _, _, _ = jax.lax.while_loop(
            cond, body, (x, ss0, jnp.float32(jnp.inf), jnp.int32(0)))
        return x_fin[:N, :D]

    return run(a_bf16, corr, x0)


# TODO(synk): the non-'mean' branch (gcn_reduce) performs per-node autograd
# (loss.backward(), clip_grad_norm_, torch.randint negative sampling over a
# DGL degree-bucketed mailbox); this is an optimization loop with no clean
# single-kernel Pallas equivalent and is not implemented here.


if __name__ == "__main__":
    key = jax.random.PRNGKey(0)
    N, D = 16, 32

    # Deterministic graph: random edges + a ring edge so every node has an
    # in-neighbor (matches DGL mean-reduce semantics for nonzero in-degree).
    k_adj, k_feat = jax.random.split(key)
    adj = (jax.random.uniform(k_adj, (N, N)) < 0.3).astype(jnp.float32)
    ring = jnp.eye(N, dtype=jnp.float32)[:, list(range(1, N)) + [0]]
    adj = jnp.clip(adj + ring, 0.0, 1.0)
    repre = jax.random.normal(k_feat, (N, D), dtype=jnp.float32)

    # --- correctness check: 5 aggregation steps vs a plain-JAX reference ---
    N_pad = _pad_to(N, _LANE)
    D_pad = _pad_to(D, _LANE)
    a_bf16, corr = _prepare(adj, N_pad)
    x0 = jnp.zeros((N_pad, D_pad), jnp.float32).at[:N, :D].set(repre)

    x_ref = x0
    for _ in range(5):
        x_ref = jnp.dot(a_bf16, x_ref.astype(jnp.bfloat16),
                        preferred_element_type=jnp.float32) * corr

    small = jax.jit(make_mean_agg(N_pad, D_pad, num_steps=5))
    x_k = small(a_bf16, corr, x0)
    x_k = jax.block_until_ready(x_k)
    assert x_k.shape == (N_pad, D_pad) and x_k.dtype == jnp.float32
    assert jnp.allclose(x_k, x_ref, atol=2e-2, rtol=2e-2), (
        float(jnp.max(jnp.abs(x_k - x_ref))))

    # --- full forward ('mean' mode) ---
    out = gmes_reduce_mean(adj, repre, num_inner=1000, tol=0.1)
    out = jax.block_until_ready(out)
    assert out.shape == (N, D) and out.dtype == jnp.float32
    assert bool(jnp.all(jnp.isfinite(out)))
    print("KERNEL_OK")
</pallas_src>

<mosaic_0001>
module attributes {stable_mosaic.version = 11 : i64} {
  func.func @_mean_agg_kernel(%arg0: i32, %arg1: memref<128x128xbf16, #tpu.memory_space<vmem>>, %arg2: memref<128x1xf32, #tpu.memory_space<vmem>>, %arg3: memref<128x128xf32, #tpu.memory_space<vmem>>, %arg4: memref<128x128xf32, #tpu.memory_space<vmem>>) attributes {dimension_semantics = [#tpu.dimension_semantics<parallel>], iteration_bounds = array<i64: 1>, scalar_prefetch = 0 : i64, scratch_operands = 0 : i64, tpu.core_type = #tpu.core_type<tc>, window_params = [{pipeline_mode = #tpu.pipeline_mode<synchronous>, transform_indices = @transform_0, window_bounds = array<i64: 128, 128>}, {pipeline_mode = #tpu.pipeline_mode<synchronous>, transform_indices = @transform_1, window_bounds = array<i64: 128, 1>}, {transform_indices = @transform_2, window_bounds = array<i64: 128, 128>}, {transform_indices = @transform_3, window_bounds = array<i64: 128, 128>}]} {
    %c0 = arith.constant 0 : index
    %c0_0 = arith.constant 0 : index
    %0 = vector.load %arg1[%c0, %c0_0] : memref<128x128xbf16, #tpu.memory_space<vmem>>, vector<128x128xbf16>
    %c0_1 = arith.constant 0 : index
    %c0_2 = arith.constant 0 : index
    %1 = vector.load %arg2[%c0_1, %c0_2] : memref<128x1xf32, #tpu.memory_space<vmem>>, vector<128x1xf32>
    %2 = vector.shape_cast %1 : vector<128x1xf32> to vector<128x1xf32>
    %3 = vector.broadcast %2 : vector<128x1xf32> to vector<128x128xf32>
    %c0_3 = arith.constant 0 : index
    %c0_4 = arith.constant 0 : index
    %4 = vector.load %arg3[%c0_3, %c0_4] : memref<128x128xf32, #tpu.memory_space<vmem>>, vector<128x128xf32>
    %5 = arith.truncf %4 : vector<128x128xf32> to vector<128x128xbf16>
    %cst = arith.constant dense<0.000000e+00> : vector<128x128xf32>
    %6 = tpu.matmul %0, %5, %cst {dimension_numbers = #tpu.dot_dimension_numbers<[1], [0], [0], [1], [0, 0, 1, 1], [], []>} : vector<128x128xbf16>, vector<128x128xbf16>, vector<128x128xf32> -> vector<128x128xf32>
    %7 = arith.mulf %6, %3 : vector<128x128xf32>
    %8 = arith.truncf %7 : vector<128x128xf32> to vector<128x128xbf16>
    %cst_5 = arith.constant dense<0.000000e+00> : vector<128x128xf32>
    %9 = tpu.matmul %0, %8, %cst_5 {dimension_numbers = #tpu.dot_dimension_numbers<[1], [0], [0], [1], [0, 0, 1, 1], [], []>} : vector<128x128xbf16>, vector<128x128xbf16>, vector<128x128xf32> -> vector<128x128xf32>
    %10 = arith.mulf %9, %3 : vector<128x128xf32>
    %11 = arith.truncf %10 : vector<128x128xf32> to vector<128x128xbf16>
    %cst_6 = arith.constant dense<0.000000e+00> : vector<128x128xf32>
    %12 = tpu.matmul %0, %11, %cst_6 {dimension_numbers = #tpu.dot_dimension_numbers<[1], [0], [0], [1], [0, 0, 1, 1], [], []>} : vector<128x128xbf16>, vector<128x128xbf16>, vector<128x128xf32> -> vector<128x128xf32>
    %13 = arith.mulf %12, %3 : vector<128x128xf32>
    %14 = arith.truncf %13 : vector<128x128xf32> to vector<128x128xbf16>
    %cst_7 = arith.constant dense<0.000000e+00> : vector<128x128xf32>
    %15 = tpu.matmul %0, %14, %cst_7 {dimension_numbers = #tpu.dot_dimension_numbers<[1], [0], [0], [1], [0, 0, 1, 1], [], []>} : vector<128x128xbf16>, vector<128x128xbf16>, vector<128x128xf32> -> vector<128x128xf32>
    %16 = arith.mulf %15, %3 : vector<128x128xf32>
    %17 = arith.truncf %16 : vector<128x128xf32> to vector<128x128xbf16>
    %cst_8 = arith.constant dense<0.000000e+00> : vector<128x128xf32>
    %18 = tpu.matmul %0, %17, %cst_8 {dimension_numbers = #tpu.dot_dimension_numbers<[1], [0], [0], [1], [0, 0, 1, 1], [], []>} : vector<128x128xbf16>, vector<128x128xbf16>, vector<128x128xf32> -> vector<128x128xf32>
    %19 = arith.mulf %18, %3 : vector<128x128xf32>
    %c0_9 = arith.constant 0 : index
    %c0_10 = arith.constant 0 : index
    %20 = vector.load %arg4[%c0_9, %c0_10] : memref<128x128xf32, #tpu.memory_space<vmem>>, vector<128x128xf32>
    tpu.vector_store %arg4[%c0_9, %c0_10], %19 {strides = array<i32>} : memref<128x128xf32, #tpu.memory_space<vmem>>, vector<128x128xf32>,
    return
  }
  func.func @transform_0(%arg0: i32) -> (i32, i32) {
    %c0_i32 = arith.constant 0 : i32
    %c0_i32_0 = arith.constant 0 : i32
    %c0_i32_1 = arith.constant 0 : i32
    return %c0_i32, %c0_i32_0 : i32, i32
  }
  func.func @transform_1(%arg0: i32) -> (i32, i32) {
    %c0_i32 = arith.constant 0 : i32
    %c0_i32_0 = arith.constant 0 : i32
    %c0_i32_1 = arith.constant 0 : i32
    return %c0_i32, %c0_i32_0 : i32, i32
  }
  func.func @transform_2(%arg0: i32) -> (i32, i32) {
    %c0_i32 = arith.constant 0 : i32
    %c0_i32_0 = arith.constant 0 : i32
    return %c0_i32, %arg0 : i32, i32
  }
  func.func @transform_3(%arg0: i32) -> (i32, i32) {
    %c0_i32 = arith.constant 0 : i32
    %c0_i32_0 = arith.constant 0 : i32
    return %c0_i32, %arg0 : i32, i32
  }
}

</mosaic_0001>

<bundles_post_ra>
// kernel: tpu_custom_call.1
= control target key start
LH: loop header
LB: loop body
LE: loop exit
PB: predicated region body
PF: predicated region fallthrough
CT: control target
= control target key end

     0   :  { %8 = vsyncpa [#allocation3], 0  ;;  %s1447_s0 = inlined_call_operand.vmem [shape: bf16[128,128], index: 0, kind: input, shape index: {}]   ;;  %s1448_s1 = inlined_call_operand.vmem [shape: f32[128,1], index: 1, kind: input, shape index: {}]   ;;  %s1449_s2 = inlined_call_operand.hbm [shape: f32[128,128], index: 2, kind: input, shape index: {}, may-alias: {2,3}]   ;;  %s1450_s3 = inlined_call_operand.hbm [shape: f32[128,128], index: 3, kind: output, shape index: {}, may-alias: {2,3}]  }
   0x1   :  { %9 = vsyncpa [#allocation4], 0  ;;  %s1167_s12 = smov [#allocation2]  }
   0x2   :  { %s19_s13 = sshll.u32 %s1167_s12, 4  ;;  %s20_s13 = int_to_ptr.vmem [resolvable:$true] %s19_s13 }
   0x3   :  { %s1131_s14 = scalar_lea.vmem %s20_s13, 2048  ;;  %p1136_p1 = scmp.lt.s32.totalorder %s20_s13, %s20_s13 }
   0x4   :  { %p1132_p0 = scmp.ne.s32.totalorder %s20_s13, %s1131_s14  ;;  %p1137_p2 = scmp.lt.s32.totalorder %s1131_s14, %s1131_s14 }
   0x6   :  { %p1138_p3 = por %p1137_p2, %p1136_p1 }
   0x8   :  { %p1139_p4 = pnand %p1138_p3, %p1132_p0 }
   0xa   :  { %1142 = shalt.err (!%p1139_p4)
}
   0xb   :  { %s1168_s15 = smov 128   ;;  %s1169_s16 = smov 8  }
   0xc   :  { %25 = dma.hbm_to_vmem [thread:$0]  %s1449_s2, 2048, %s20_s13, [#allocation3], %s1168_s15, %s1168_s15, %s1169_s16  }
   0xd   :  { %1163 = dma.done.wait [#allocation3], 2048  }
   0xe   :  { %1164 = vsyncadd [#allocation3], 4294965248  ;;  %v1170_v0 = vmov 0   ;;  %v156_v1 = vld [vmem:[#allocation2 + $0x70] sm:$0xff]  ;;  %v157_v2 = vld [vmem:[#allocation2 + $0x78] sm:$0xff] }
   0xf   :  { %1113 = vset.pattern.permute.xlu0 %v1170_v0  ;;  %1114 = vset.pattern.permute.xlu1 %v1170_v0  ;;  %v154_v3 = vld [vmem:[#allocation2 + $0x60] sm:$0xff]  ;;  %v165_v4 = vpack.c.bf16 %v157_v2, %v156_v1  ;;  %v155_v5 = vld [vmem:[#allocation2 + $0x68] sm:$0xff]  ;;  %v152_v7 = vld [vmem:[#allocation2 + $0x50] sm:$0xff] }
  0x10   :  { %v164_v6 = vpack.c.bf16 %v155_v5, %v154_v3  ;;  %v153_v8 = vld [vmem:[#allocation2 + $0x58] sm:$0xff]  ;;  %v150_v9 = vld [vmem:[#allocation2 + $0x40] sm:$0xff]  ;;  %v151_v11 = vld [vmem:[#allocation2 + $0x48] sm:$0xff] }
  0x11   :  { %932 = vmatprep.subr.bf16.mxu0 %v165_v4  ;;  %v163_v10 = vpack.c.bf16 %v153_v8, %v152_v7  ;;  %v1201_v12 = vld [vmem:[%s1447_s0] sm:$0xff]   ;;  %v162_v13 = vpack.c.bf16 %v151_v11, %v150_v9  ;;  %v148_v14 = vld [vmem:[#allocation2 + $0x30] sm:$0xff]  ;;  %v149_v15 = vld [vmem:[#allocation2 + $0x38] sm:$0xff] }
  0x12   :  { %933 = vmatpush3.bf16.msra.mxu0 %v165_v4  ;;  %948 = vmatprep.mubr.bf16.mxu0 %v1201_v12  ;;  %v161_v16 = vpack.c.bf16 %v149_v15, %v148_v14  ;;  %v60_v17 = vld [vmem:[%s1448_s1 + $0x70] sm:$0xff]  ;;  %v146_v18 = vld [vmem:[#allocation2 + $0x20] sm:$0xff]  ;;  %v147_v19 = vld [vmem:[#allocation2 + $0x28] sm:$0xff] }
  0x13   :  { %934 = vmatprep.subr.bf16.mxu0 %v164_v6  ;;  %980 = vmatprep.mubr.bf16.mxu1 %v1201_v12  ;;  %v58_v20 = vld [vmem:[%s1448_s1 + $0x60] sm:$0xff]  ;;  %v61_v21 = vld [vmem:[%s1448_s1 + $0x78] sm:$0xff]  ;;  %v59_v22 = vld [vmem:[%s1448_s1 + $0x68] sm:$0xff]  ;;  %v160_v23 = vpack.c.bf16 %v147_v19, %v146_v18 }
  0x14   :  { %134 = vperm.xlu0 %1113, %v60_v17   ;;  %124 = vperm.xlu1 %1114, %v58_v20   ;;  %v144_v24 = vld [vmem:[#allocation2 + $0x10] sm:$0xff]  ;;  %v145_v25 = vld [vmem:[#allocation2 + $0x18] sm:$0xff]  ;;  %v142_v29 = vld [vmem:[#allocation2] sm:$0xff] }
  0x15   :  { %v56_v26 = vld [vmem:[%s1448_s1 + $0x50] sm:$0xff]  ;;  %v57_v27 = vld [vmem:[%s1448_s1 + $0x58] sm:$0xff]  ;;  %v159_v28 = vpack.c.bf16 %v145_v25, %v144_v24  ;;  %v143_v30 = vld [vmem:[#allocation2 + $0x8] sm:$0xff] }
  0x16   :  { %935 = vmatpush3.bf16.msra.mxu0 %v164_v6  ;;  %v54_v31 = vld [vmem:[%s1448_s1 + $0x40] sm:$0xff]  ;;  %v55_v32 = vld [vmem:[%s1448_s1 + $0x48] sm:$0xff]  ;;  %v158_v33 = vpack.c.bf16 %v143_v30, %v142_v29  ;;  %v52_v34 = vld [vmem:[%s1448_s1 + $0x30] sm:$0xff] }
  0x17   :  { %936 = vmatprep.subr.bf16.mxu0 %v163_v10  ;;  %v53_v35 = vld [vmem:[%s1448_s1 + $0x38] sm:$0xff]  ;;  %v1238_v36 = vld [vmem:[%s1447_s0 + $0x8] sm:$0xff]   ;;  %v50_v37 = vld [vmem:[%s1448_s1 + $0x20] sm:$0xff] }
  0x18   :  { %139 = vperm.xlu0 %1113, %v61_v21   ;;  %129 = vperm.xlu1 %1114, %v59_v22   ;;  %v1246_v38 = vld [vmem:[%s1447_s0 + $0x10] sm:$0xff]   ;;  %v51_v39 = vld [vmem:[%s1448_s1 + $0x28] sm:$0xff]  ;;  %v49_v41 = vld [vmem:[%s1448_s1 + $0x18] sm:$0xff] }
  0x19   :  { %v48_v40 = vld [vmem:[%s1448_s1 + $0x10] sm:$0xff]  ;;  %v1262_v42 = vld [vmem:[%s1447_s0 + $0x18] sm:$0xff]   ;;  %v46_v43 = vld [vmem:[%s1448_s1] sm:$0xff] }
  0x1a   :  { %937 = vmatpush3.bf16.msra.mxu0 %v163_v10  ;;  %v1270_v44 = vld [vmem:[%s1447_s0 + $0x20] sm:$0xff]   ;;  %v47_v45 = vld [vmem:[%s1448_s1 + $0x8] sm:$0xff]  ;;  %v1285_v47 = vld [vmem:[%s1447_s0 + $0x30] sm:$0xff]  }
  0x1b   :  { %938 = vmatprep.subr.bf16.mxu0 %v162_v13  ;;  %v1280_v46 = vld [vmem:[%s1447_s0 + $0x28] sm:$0xff]   ;;  %v1292_v48 = vld [vmem:[%s1447_s0 + $0x38] sm:$0xff]   ;;  %s1171_s0 = smov [#allocation5]  }
  0x1c   :  { %114 = vperm.xlu0 %1113, %v56_v26   ;;  %119 = vperm.xlu1 %1114, %v57_v27   ;;  %s832_s12 = sshll.u32 %s1171_s0, 4  ;;  %s833_s12 = int_to_ptr.vmem [resolvable:$true] %s832_s12 }
  0x1d   :  { %s1143_s13 = scalar_lea.vmem %s833_s12, 2048  ;;  %p1148_p6 = scmp.lt.s32.totalorder %s833_s12, %s833_s12 }
  0x1e   :  { %939 = vmatpush3.bf16.msra.mxu0 %v162_v13  ;;  %p1144_p5 = scmp.ne.s32.totalorder %s833_s12, %s1143_s13  ;;  %p1149_p7 = scmp.lt.s32.totalorder %s1143_s13, %s1143_s13 }
  0x1f   :  { %940 = vmatprep.subr.bf16.mxu0 %v161_v16 }
  0x20   :  { %104 = vperm.xlu0 %1113, %v54_v31   ;;  %109 = vperm.xlu1 %1114, %v55_v32   ;;  %p1150_p8 = por %p1149_p7, %p1148_p6 }
  0x22   :  { %941 = vmatpush3.bf16.msra.mxu0 %v161_v16  ;;  %p1151_p9 = pnand %p1150_p8, %p1144_p5 }
  0x23   :  { %942 = vmatprep.subr.bf16.mxu0 %v160_v23 }
  0x24   :  { %94 = vperm.xlu0 %1113, %v52_v34   ;;  %99 = vperm.xlu1 %1114, %v53_v35  }
  0x26   :  { %943 = vmatpush3.bf16.msra.mxu0 %v160_v23 }
  0x27   :  { %944 = vmatprep.subr.bf16.mxu0 %v159_v28 }
  0x28   :  { %84 = vperm.xlu0 %1113, %v50_v37   ;;  %89 = vperm.xlu1 %1114, %v51_v39  }
  0x2a   :  { %945 = vmatpush3.bf16.msra.mxu0 %v159_v28 }
  0x2b   :  { %946 = vmatprep.subr.bf16.mxu0 %v158_v33 }
  0x2c   :  { %74 = vperm.xlu0 %1113, %v48_v40   ;;  %79 = vperm.xlu1 %1114, %v49_v41  }
  0x2e   :  { %947 = vmatpush3.bf16.msra.mxu0 %v158_v33 }
  0x30   :  { %64 = vperm.xlu0 %1113, %v46_v43   ;;  %69 = vperm.xlu1 %1114, %v47_v45  }
  0x31   :  { %949 = vmatmul.mubr.bf16.vlgmr.msra.gmra.mxu0 %v1238_v36 }
  0x32   :  { %952 = vmatprep.mubr.bf16.mxu0 %v1246_v38 }
  0x39   :  { %953 = vmatmul.mubr.bf16.gmra.mxu0 %v1262_v42 }
  0x3a   :  { %956 = vmatprep.mubr.bf16.mxu0 %v1270_v44 }
  0x41   :  { %957 = vmatmul.mubr.bf16.gmra.mxu0 %v1280_v46 }
  0x42   :  { %960 = vmatprep.mubr.bf16.mxu0 %v1285_v47 }
  0x49   :  { %961 = vmatmul.mubr.bf16.gmra.mxu0 %v1292_v48 }
  0x4a   :  { %1012 = vmatprep.mubr.bf16.mxu0 %v1201_v12 }
  0x8f   :  { %v1298_v53 = vpop.permute.xlu1 %124  ;;  %v1300_v55 = vpop.permute.xlu0 %134 }
  0x93   :  { %v1302_v58 = vpop.permute.xlu1 %129  ;;  %v1304_v60 = vpop.permute.xlu0 %139 }
  0x97   :  { %v1306_v63 = vpop.permute.xlu1 %119  ;;  %v1308_v1 = vpop.permute.xlu0 %114 }
  0x9b   :  { %v1310_v4 = vpop.permute.xlu1 %109  ;;  %v1312_v6 = vpop.permute.xlu0 %104 }
  0x9f   :  { %v1318_v15 = vpop.permute.xlu1 %99  ;;  %v1321_v18 = vpop.permute.xlu0 %94 }
  0xa3   :  { %v1325_v22 = vpop.permute.xlu1 %89  ;;  %v1328_v24 = vpop.permute.xlu0 %84 }
  0xa7   :  { %v1332_v28 = vpop.permute.xlu1 %79  ;;  %v1335_v31 = vpop.permute.xlu0 %74 }
  0xab   :  { %v1339_v35 = vpop.permute.xlu1 %69  ;;  %v1342_v39 = vpop.permute.xlu0 %64 }
  0xf1   :  { %v950_v49 = vpop.f32.mrf.mxu0 }
  0xf2   :  { %v313_v37 = vmul.f32 %v950_v49, %v1335_v31 }
  0xf3   :  { %v1296_v50 = vpop.f32.mrf.mxu0 }
  0xf4   :  { %v311_v43 = vmul.f32 %v1296_v50, %v1342_v39 }
  0xf5   :  { %v951_v51 = vpop.f32.mrf.mxu0 }
  0xf6   :  { %v314_v33 = vmul.f32 %v951_v51, %v1332_v28 }
  0xf7   :  { %v251_v52 = vpop.f32.mrf.mxu0 }
  0xf8   :  { %v328_v40 = vpack.c.bf16 %v314_v33, %v313_v37  ;;  %v312_v41 = vmul.f32 %v251_v52, %v1339_v35 }
  0xf9   :  { %v954_v54 = vpop.f32.mrf.mxu0 }
  0xfa   :  { %v317_v27 = vmul.f32 %v954_v54, %v1321_v18  ;;  %v327_v45 = vpack.c.bf16 %v312_v41, %v311_v43 }
  0xfb   :  { %v264_v56 = vpop.f32.mrf.mxu0 }
  0xfc   :  { %v315_v32 = vmul.f32 %v264_v56, %v1328_v24 }
  0xfd   :  { %v955_v57 = vpop.f32.mrf.mxu0 }
  0xfe   :  { %v318_v25 = vmul.f32 %v955_v57, %v1318_v15 }
  0xff   :  { %v267_v59 = vpop.f32.mrf.mxu0 }
 0x100   :  { %v330_v29 = vpack.c.bf16 %v318_v25, %v317_v27  ;;  %v316_v30 = vmul.f32 %v267_v59, %v1325_v22 }
 0x101   :  { %v958_v61 = vpop.f32.mrf.mxu0 }
 0x102   :  { %v321_v19 = vmul.f32 %v958_v61, %v1308_v1  ;;  %v329_v34 = vpack.c.bf16 %v316_v30, %v315_v32 }
 0x103   :  { %v280_v62 = vpop.f32.mrf.mxu0 }
 0x104   :  { %v319_v23 = vmul.f32 %v280_v62, %v1312_v6 }
 0x105   :  { %v959_v0 = vpop.f32.mrf.mxu0 }
 0x106   :  { %v322_v16 = vmul.f32 %v959_v0, %v1306_v63 }
 0x107   :  { %v283_v2 = vpop.f32.mrf.mxu0 }
 0x108   :  { %v332_v20 = vpack.c.bf16 %v322_v16, %v321_v19  ;;  %v320_v21 = vmul.f32 %v283_v2, %v1310_v4 }
 0x109   :  { %v962_v3 = vpop.f32.mrf.mxu0 }
 0x10a   :  { %v325_v8 = vmul.f32 %v962_v3, %v1300_v55  ;;  %v331_v26 = vpack.c.bf16 %v320_v21, %v319_v23 }
 0x10b   :  { %v296_v5 = vpop.f32.mrf.mxu0 }
 0x10c   :  { %v323_v11 = vmul.f32 %v296_v5, %v1298_v53 }
 0x10d   :  { %v963_v7 = vpop.f32.mrf.mxu0 }
 0x10e   :  { %v326_v9 = vmul.f32 %v963_v7, %v1304_v60 }
 0x10f   :  { %v299_v10 = vpop.f32.mrf.mxu0 }
 0x110   :  { %v324_v13 = vmul.f32 %v299_v10, %v1302_v58  ;;  %v334_v14 = vpack.c.bf16 %v326_v9, %v325_v8 }
 0x112   :  { %v333_v17 = vpack.c.bf16 %v324_v13, %v323_v11  ;;  %964 = vmatprep.subr.bf16.mxu1 %v334_v14 }
 0x113   :  { %965 = vmatpush3.bf16.msra.mxu1 %v334_v14 }
 0x114   :  { %966 = vmatprep.subr.bf16.mxu1 %v333_v17 }
 0x117   :  { %967 = vmatpush3.bf16.msra.mxu1 %v333_v17 }
 0x118   :  { %968 = vmatprep.subr.bf16.mxu1 %v332_v20 }
 0x11b   :  { %969 = vmatpush3.bf16.msra.mxu1 %v332_v20 }
 0x11c   :  { %970 = vmatprep.subr.bf16.mxu1 %v331_v26 }
 0x11f   :  { %971 = vmatpush3.bf16.msra.mxu1 %v331_v26 }
 0x120   :  { %972 = vmatprep.subr.bf16.mxu1 %v330_v29 }
 0x123   :  { %973 = vmatpush3.bf16.msra.mxu1 %v330_v29 }
 0x124   :  { %974 = vmatprep.subr.bf16.mxu1 %v329_v34 }
 0x127   :  { %975 = vmatpush3.bf16.msra.mxu1 %v329_v34 }
 0x128   :  { %976 = vmatprep.subr.bf16.mxu1 %v328_v40 }
 0x12b   :  { %977 = vmatpush3.bf16.msra.mxu1 %v328_v40 }
 0x12c   :  { %978 = vmatprep.subr.bf16.mxu1 %v327_v45 }
 0x12f   :  { %979 = vmatpush3.bf16.msra.mxu1 %v327_v45 }
 0x132   :  { %981 = vmatmul.mubr.bf16.vlgmr.msra.gmra.mxu1 %v1238_v36 }
 0x133   :  { %984 = vmatprep.mubr.bf16.mxu1 %v1246_v38 }
 0x13a   :  { %985 = vmatmul.mubr.bf16.gmra.mxu1 %v1262_v42 }
 0x13b   :  { %988 = vmatprep.mubr.bf16.mxu1 %v1270_v44 }
 0x142   :  { %989 = vmatmul.mubr.bf16.gmra.mxu1 %v1280_v46 }
 0x143   :  { %992 = vmatprep.mubr.bf16.mxu1 %v1285_v47 }
 0x14a   :  { %993 = vmatmul.mubr.bf16.gmra.mxu1 %v1292_v48 }
 0x14b   :  { %1044 = vmatprep.mubr.bf16.mxu1 %v1201_v12 }
 0x1f2   :  { %v982_v49 = vpop.f32.mrf.mxu1 }
 0x1f3   :  { %v434_v37 = vmul.f32 %v982_v49, %v1335_v31 }
 0x1f4   :  { %v369_v50 = vpop.f32.mrf.mxu1 }
 0x1f5   :  { %v432_v43 = vmul.f32 %v369_v50, %v1342_v39 }
 0x1f6   :  { %v983_v51 = vpop.f32.mrf.mxu1 }
 0x1f7   :  { %v435_v33 = vmul.f32 %v983_v51, %v1332_v28 }
 0x1f8   :  { %v372_v52 = vpop.f32.mrf.mxu1 }
 0x1f9   :  { %v449_v40 = vpack.c.bf16 %v435_v33, %v434_v37  ;;  %v433_v41 = vmul.f32 %v372_v52, %v1339_v35 }
 0x1fa   :  { %v986_v54 = vpop.f32.mrf.mxu1 }
 0x1fb   :  { %v438_v27 = vmul.f32 %v986_v54, %v1321_v18  ;;  %v448_v45 = vpack.c.bf16 %v433_v41, %v432_v43 }
 0x1fc   :  { %v385_v56 = vpop.f32.mrf.mxu1 }
 0x1fd   :  { %v436_v32 = vmul.f32 %v385_v56, %v1328_v24 }
 0x1fe   :  { %v987_v57 = vpop.f32.mrf.mxu1 }
 0x1ff   :  { %v439_v25 = vmul.f32 %v987_v57, %v1318_v15 }
 0x200   :  { %v388_v59 = vpop.f32.mrf.mxu1 }
 0x201   :  { %v451_v29 = vpack.c.bf16 %v439_v25, %v438_v27  ;;  %v437_v30 = vmul.f32 %v388_v59, %v1325_v22 }
 0x202   :  { %v990_v61 = vpop.f32.mrf.mxu1 }
 0x203   :  { %v442_v19 = vmul.f32 %v990_v61, %v1308_v1  ;;  %v450_v34 = vpack.c.bf16 %v437_v30, %v436_v32 }
 0x204   :  { %v401_v62 = vpop.f32.mrf.mxu1 }
 0x205   :  { %v440_v23 = vmul.f32 %v401_v62, %v1312_v6 }
 0x206   :  { %v991_v0 = vpop.f32.mrf.mxu1 }
 0x207   :  { %v443_v16 = vmul.f32 %v991_v0, %v1306_v63 }
 0x208   :  { %v404_v2 = vpop.f32.mrf.mxu1 }
 0x209   :  { %v453_v20 = vpack.c.bf16 %v443_v16, %v442_v19  ;;  %v441_v21 = vmul.f32 %v404_v2, %v1310_v4 }
 0x20a   :  { %v994_v3 = vpop.f32.mrf.mxu1 }
 0x20b   :  { %v446_v8 = vmul.f32 %v994_v3, %v1300_v55  ;;  %v452_v26 = vpack.c.bf16 %v441_v21, %v440_v23 }
 0x20c   :  { %v417_v5 = vpop.f32.mrf.mxu1 }
 0x20d   :  { %v444_v11 = vmul.f32 %v417_v5, %v1298_v53 }
 0x20e   :  { %v995_v7 = vpop.f32.mrf.mxu1 }
 0x20f   :  { %v447_v9 = vmul.f32 %v995_v7, %v1304_v60 }
 0x210   :  { %v420_v10 = vpop.f32.mrf.mxu1 }
 0x211   :  { %v455_v13 = vpack.c.bf16 %v447_v9, %v446_v8  ;;  %v445_v14 = vmul.f32 %v420_v10, %v1302_v58 }
 0x213   :  { %v454_v17 = vpack.c.bf16 %v445_v14, %v444_v11  ;;  %996 = vmatprep.subr.bf16.mxu0 %v455_v13 }
 0x214   :  { %997 = vmatpush3.bf16.msra.mxu0 %v455_v13 }
 0x215   :  { %998 = vmatprep.subr.bf16.mxu0 %v454_v17 }
 0x218   :  { %999 = vmatpush3.bf16.msra.mxu0 %v454_v17 }
 0x219   :  { %1000 = vmatprep.subr.bf16.mxu0 %v453_v20 }
 0x21c   :  { %1001 = vmatpush3.bf16.msra.mxu0 %v453_v20 }
 0x21d   :  { %1002 = vmatprep.subr.bf16.mxu0 %v452_v26 }
 0x220   :  { %1003 = vmatpush3.bf16.msra.mxu0 %v452_v26 }
 0x221   :  { %1004 = vmatprep.subr.bf16.mxu0 %v451_v29 }
 0x224   :  { %1005 = vmatpush3.bf16.msra.mxu0 %v451_v29 }
 0x225   :  { %1006 = vmatprep.subr.bf16.mxu0 %v450_v34 }
 0x228   :  { %1007 = vmatpush3.bf16.msra.mxu0 %v450_v34 }
 0x229   :  { %1008 = vmatprep.subr.bf16.mxu0 %v449_v40 }
 0x22c   :  { %1009 = vmatpush3.bf16.msra.mxu0 %v449_v40 }
 0x22d   :  { %1010 = vmatprep.subr.bf16.mxu0 %v448_v45 }
 0x230   :  { %1011 = vmatpush3.bf16.msra.mxu0 %v448_v45 }
 0x233   :  { %1013 = vmatmul.mubr.bf16.vlgmr.msra.gmra.mxu0 %v1238_v36 }
 0x234   :  { %1016 = vmatprep.mubr.bf16.mxu0 %v1246_v38 }
 0x23b   :  { %1017 = vmatmul.mubr.bf16.gmra.mxu0 %v1262_v42 }
 0x23c   :  { %1020 = vmatprep.mubr.bf16.mxu0 %v1270_v44 }
 0x243   :  { %1021 = vmatmul.mubr.bf16.gmra.mxu0 %v1280_v46 }
 0x244   :  { %1024 = vmatprep.mubr.bf16.mxu0 %v1285_v47 }
 0x24b   :  { %1025 = vmatmul.mubr.bf16.gmra.mxu0 %v1292_v48 }
 0x24c   :  { %1076 = vmatprep.mubr.bf16.mxu0 %v1201_v12 }
 0x2f3   :  { %v1014_v49 = vpop.f32.mrf.mxu0 }
 0x2f4   :  { %v555_v34 = vmul.f32 %v1014_v49, %v1335_v31 }
 0x2f5   :  { %v490_v50 = vpop.f32.mrf.mxu0 }
 0x2f6   :  { %v553_v41 = vmul.f32 %v490_v50, %v1342_v39 }
 0x2f7   :  { %v1015_v51 = vpop.f32.mrf.mxu0 }
 0x2f8   :  { %v556_v32 = vmul.f32 %v1015_v51, %v1332_v28 }
 0x2f9   :  { %v493_v52 = vpop.f32.mrf.mxu0 }
 0x2fa   :  { %v570_v37 = vpack.c.bf16 %v556_v32, %v555_v34  ;;  %v554_v40 = vmul.f32 %v493_v52, %v1339_v35 }
 0x2fb   :  { %v1018_v54 = vpop.f32.mrf.mxu0 }
 0x2fc   :  { %v559_v26 = vmul.f32 %v1018_v54, %v1321_v18  ;;  %v569_v43 = vpack.c.bf16 %v554_v40, %v553_v41 }
 0x2fd   :  { %v506_v56 = vpop.f32.mrf.mxu0 }
 0x2fe   :  { %v557_v30 = vmul.f32 %v506_v56, %v1328_v24 }
 0x2ff   :  { %v1019_v57 = vpop.f32.mrf.mxu0 }
 0x300   :  { %v560_v23 = vmul.f32 %v1019_v57, %v1318_v15 }
 0x301   :  { %v509_v59 = vpop.f32.mrf.mxu0 }
 0x302   :  { %v572_v27 = vpack.c.bf16 %v560_v23, %v559_v26  ;;  %v558_v29 = vmul.f32 %v509_v59, %v1325_v22 }
 0x303   :  { %v1022_v61 = vpop.f32.mrf.mxu0 }
 0x304   :  { %v563_v17 = vmul.f32 %v1022_v61, %v1308_v1  ;;  %v571_v33 = vpack.c.bf16 %v558_v29, %v557_v30 }
 0x305   :  { %v522_v62 = vpop.f32.mrf.mxu0 }
 0x306   :  { %v561_v21 = vmul.f32 %v522_v62, %v1312_v6 }
 0x307   :  { %v1023_v0 = vpop.f32.mrf.mxu0 }
 0x308   :  { %v564_v14 = vmul.f32 %v1023_v0, %v1306_v63 }
 0x309   :  { %v525_v2 = vpop.f32.mrf.mxu0 }
 0x30a   :  { %v574_v19 = vpack.c.bf16 %v564_v14, %v563_v17  ;;  %v562_v20 = vmul.f32 %v525_v2, %v1310_v4 }
 0x30b   :  { %v1026_v3 = vpop.f32.mrf.mxu0 }
 0x30c   :  { %v567_v8 = vmul.f32 %v1026_v3, %v1300_v55  ;;  %v573_v25 = vpack.c.bf16 %v562_v20, %v561_v21 }
 0x30d   :  { %v538_v5 = vpop.f32.mrf.mxu0 }
 0x30e   :  { %v565_v10 = vmul.f32 %v538_v5, %v1298_v53 }
 0x30f   :  { %v1027_v7 = vpop.f32.mrf.mxu0 }
 0x310   :  { %v568_v9 = vmul.f32 %v1027_v7, %v1304_v60 }
 0x311   :  { %v541_v12 = vpop.f32.mrf.mxu0 }
 0x312   :  { %v576_v11 = vpack.c.bf16 %v568_v9, %v567_v8  ;;  %v566_v13 = vmul.f32 %v541_v12, %v1302_v58 }
 0x314   :  { %v575_v16 = vpack.c.bf16 %v566_v13, %v565_v10  ;;  %1028 = vmatprep.subr.bf16.mxu1 %v576_v11 }
 0x315   :  { %1029 = vmatpush3.bf16.msra.mxu1 %v576_v11 }
 0x316   :  { %1030 = vmatprep.subr.bf16.mxu1 %v575_v16 }
 0x319   :  { %1031 = vmatpush3.bf16.msra.mxu1 %v575_v16 }
 0x31a   :  { %1032 = vmatprep.subr.bf16.mxu1 %v574_v19 }
 0x31d   :  { %1033 = vmatpush3.bf16.msra.mxu1 %v574_v19 }
 0x31e   :  { %1034 = vmatprep.subr.bf16.mxu1 %v573_v25 }
 0x321   :  { %1035 = vmatpush3.bf16.msra.mxu1 %v573_v25 }
 0x322   :  { %1036 = vmatprep.subr.bf16.mxu1 %v572_v27 }
 0x325   :  { %1037 = vmatpush3.bf16.msra.mxu1 %v572_v27 }
 0x326   :  { %1038 = vmatprep.subr.bf16.mxu1 %v571_v33 }
 0x329   :  { %1039 = vmatpush3.bf16.msra.mxu1 %v571_v33 }
 0x32a   :  { %1040 = vmatprep.subr.bf16.mxu1 %v570_v37 }
 0x32d   :  { %1041 = vmatpush3.bf16.msra.mxu1 %v570_v37 }
 0x32e   :  { %1042 = vmatprep.subr.bf16.mxu1 %v569_v43 }
 0x331   :  { %1043 = vmatpush3.bf16.msra.mxu1 %v569_v43 }
 0x334   :  { %1045 = vmatmul.mubr.bf16.vlgmr.msra.gmra.mxu1 %v1238_v36 }
 0x335   :  { %1048 = vmatprep.mubr.bf16.mxu1 %v1246_v38 }
 0x33c   :  { %1049 = vmatmul.mubr.bf16.gmra.mxu1 %v1262_v42 }
 0x33d   :  { %1052 = vmatprep.mubr.bf16.mxu1 %v1270_v44 }
 0x344   :  { %1053 = vmatmul.mubr.bf16.gmra.mxu1 %v1280_v46 }
 0x345   :  { %1056 = vmatprep.mubr.bf16.mxu1 %v1285_v47 }
 0x34c   :  { %1057 = vmatmul.mubr.bf16.gmra.mxu1 %v1292_v48 }
 0x34d   :  { %1084 = vmatprep.mubr.bf16.mxu1 %v1270_v44 }
 0x3f4   :  { %v1046_v45 = vpop.f32.mrf.mxu1 }
 0x3f5   :  { %v676_v32 = vmul.f32 %v1046_v45, %v1335_v31 }
 0x3f6   :  { %v611_v49 = vpop.f32.mrf.mxu1 }
 0x3f7   :  { %v674_v37 = vmul.f32 %v611_v49, %v1342_v39 }
 0x3f8   :  { %v1047_v50 = vpop.f32.mrf.mxu1 }
 0x3f9   :  { %v677_v29 = vmul.f32 %v1047_v50, %v1332_v28 }
 0x3fa   :  { %v614_v51 = vpop.f32.mrf.mxu1 }
 0x3fb   :  { %v691_v33 = vpack.c.bf16 %v677_v29, %v676_v32  ;;  %v675_v34 = vmul.f32 %v614_v51, %v1339_v35 }
 0x3fc   :  { %v1050_v52 = vpop.f32.mrf.mxu1 }
 0x3fd   :  { %v680_v23 = vmul.f32 %v1050_v52, %v1321_v18  ;;  %v690_v40 = vpack.c.bf16 %v675_v34, %v674_v37 }
 0x3fe   :  { %v627_v54 = vpop.f32.mrf.mxu1 }
 0x3ff   :  { %v678_v27 = vmul.f32 %v627_v54, %v1328_v24 }
 0x400   :  { %v1051_v56 = vpop.f32.mrf.mxu1 }
 0x401   :  { %v681_v20 = vmul.f32 %v1051_v56, %v1318_v15 }
 0x402   :  { %v630_v57 = vpop.f32.mrf.mxu1 }
 0x403   :  { %v693_v25 = vpack.c.bf16 %v681_v20, %v680_v23  ;;  %v679_v26 = vmul.f32 %v630_v57, %v1325_v22 }
 0x404   :  { %v1054_v59 = vpop.f32.mrf.mxu1 }
 0x405   :  { %v684_v14 = vmul.f32 %v1054_v59, %v1308_v1  ;;  %v692_v30 = vpack.c.bf16 %v679_v26, %v678_v27 }
 0x406   :  { %v643_v61 = vpop.f32.mrf.mxu1 }
 0x407   :  { %v682_v19 = vmul.f32 %v643_v61, %v1312_v6 }
 0x408   :  { %v1055_v62 = vpop.f32.mrf.mxu1 }
 0x409   :  { %v685_v11 = vmul.f32 %v1055_v62, %v1306_v63 }
 0x40a   :  { %v646_v0 = vpop.f32.mrf.mxu1 }
 0x40b   :  { %v695_v16 = vpack.c.bf16 %v685_v11, %v684_v14  ;;  %v683_v17 = vmul.f32 %v646_v0, %v1310_v4 }
 0x40c   :  { %v1058_v2 = vpop.f32.mrf.mxu1 }
 0x40d   :  { %v688_v7 = vmul.f32 %v1058_v2, %v1300_v55  ;;  %v694_v21 = vpack.c.bf16 %v683_v17, %v682_v19 }
 0x40e   :  { %v659_v3 = vpop.f32.mrf.mxu1 }
 0x40f   :  { %v686_v9 = vmul.f32 %v659_v3, %v1298_v53 }
 0x410   :  { %v1059_v5 = vpop.f32.mrf.mxu1 }
 0x411   :  { %v689_v8 = vmul.f32 %v1059_v5, %v1304_v60 }
 0x412   :  { %v662_v44 = vpop.f32.mrf.mxu1 }
 0x413   :  { %v697_v12 = vpack.c.bf16 %v689_v8, %v688_v7  ;;  %v687_v10 = vmul.f32 %v662_v44, %v1302_v58 }
 0x415   :  { %v696_v13 = vpack.c.bf16 %v687_v10, %v686_v9  ;;  %1060 = vmatprep.subr.bf16.mxu0 %v697_v12  ;;  %1092 = vmatprep.subr.bf16.mxu1 %v697_v12 }
 0x416   :  { %1061 = vmatpush3.bf16.msra.mxu0 %v697_v12  ;;  %1100 = vmatpush3.bf16.msra.mxu1 %v697_v12 }
 0x417   :  { %1062 = vmatprep.subr.bf16.mxu0 %v696_v13  ;;  %1093 = vmatprep.subr.bf16.mxu1 %v696_v13 }
 0x41a   :  { %1063 = vmatpush3.bf16.msra.mxu0 %v696_v13  ;;  %1101 = vmatpush3.bf16.msra.mxu1 %v696_v13 }
 0x41b   :  { %1064 = vmatprep.subr.bf16.mxu0 %v695_v16  ;;  %1094 = vmatprep.subr.bf16.mxu1 %v695_v16 }
 0x41e   :  { %1065 = vmatpush3.bf16.msra.mxu0 %v695_v16  ;;  %1102 = vmatpush3.bf16.msra.mxu1 %v695_v16 }
 0x41f   :  { %1066 = vmatprep.subr.bf16.mxu0 %v694_v21  ;;  %1095 = vmatprep.subr.bf16.mxu1 %v694_v21 }
 0x422   :  { %1067 = vmatpush3.bf16.msra.mxu0 %v694_v21  ;;  %1103 = vmatpush3.bf16.msra.mxu1 %v694_v21 }
 0x423   :  { %1068 = vmatprep.subr.bf16.mxu0 %v693_v25  ;;  %1096 = vmatprep.subr.bf16.mxu1 %v693_v25 }
 0x426   :  { %1069 = vmatpush3.bf16.msra.mxu0 %v693_v25  ;;  %1104 = vmatpush3.bf16.msra.mxu1 %v693_v25 }
 0x427   :  { %1070 = vmatprep.subr.bf16.mxu0 %v692_v30  ;;  %1097 = vmatprep.subr.bf16.mxu1 %v692_v30 }
 0x42a   :  { %1071 = vmatpush3.bf16.msra.mxu0 %v692_v30  ;;  %1105 = vmatpush3.bf16.msra.mxu1 %v692_v30 }
 0x42b   :  { %1072 = vmatprep.subr.bf16.mxu0 %v691_v33  ;;  %1098 = vmatprep.subr.bf16.mxu1 %v691_v33 }
 0x42e   :  { %1073 = vmatpush3.bf16.msra.mxu0 %v691_v33  ;;  %1106 = vmatpush3.bf16.msra.mxu1 %v691_v33 }
 0x42f   :  { %1074 = vmatprep.subr.bf16.mxu0 %v690_v40  ;;  %1099 = vmatprep.subr.bf16.mxu1 %v690_v40 }
 0x432   :  { %1075 = vmatpush3.bf16.msra.mxu0 %v690_v40  ;;  %1107 = vmatpush3.bf16.msra.mxu1 %v690_v40 }
 0x435   :  { %1077 = vmatmul.mubr.bf16.vlgmr.msra.gmra.mxu0 %v1238_v36  ;;  %1085 = vmatmul.mubr.bf16.vlgmr.msra.gmra.mxu1 %v1280_v46 }
 0x436   :  { %1080 = vmatprep.mubr.bf16.mxu0 %v1246_v38  ;;  %1088 = vmatprep.mubr.bf16.mxu1 %v1285_v47 }
 0x43d   :  { %1081 = vmatmul.mubr.bf16.gmra.mxu0 %v1262_v42  ;;  %1089 = vmatmul.mubr.bf16.gmra.mxu1 %v1292_v48 }
 0x4f5   :  { %v1078_v41 = vpop.f32.mrf.mxu0  ;;  %v1086_v43 = vpop.f32.mrf.mxu1 }
 0x4f6   :  { %v797_v45 = vmul.f32 %v1078_v41, %v1335_v31  ;;  %v805_v49 = vmul.f32 %v1086_v43, %v1308_v1 }
 0x4f7   :  { %v732_v50 = vpop.f32.mrf.mxu0  ;;  %v764_v51 = vpop.f32.mrf.mxu1 }
 0x4f8   :  { %813 = vst [vmem:[#allocation5 + $0x10] sm:$0xff] %v797_v45  ;;  %821 = vst [vmem:[#allocation5 + $0x50] sm:$0xff] %v805_v49  ;;  %v795_v36 = vmul.f32 %v732_v50, %v1342_v39  ;;  %v803_v38 = vmul.f32 %v764_v51, %v1312_v6 }
 0x4f9   :  { %v1079_v46 = vpop.f32.mrf.mxu0  ;;  %v1087_v47 = vpop.f32.mrf.mxu1 }
 0x4fa   :  { %811 = vst [vmem:[#allocation5] sm:$0xff] %v795_v36  ;;  %819 = vst [vmem:[#allocation5 + $0x40] sm:$0xff] %v803_v38  ;;  %v798_v42 = vmul.f32 %v1079_v46, %v1332_v28  ;;  %v806_v48 = vmul.f32 %v1087_v47, %v1306_v63 }
 0x4fb   :  { %v735_v52 = vpop.f32.mrf.mxu0  ;;  %v767_v31 = vpop.f32.mrf.mxu1 }
 0x4fc   :  { %814 = vst [vmem:[#allocation5 + $0x18] sm:$0xff] %v798_v42  ;;  %822 = vst [vmem:[#allocation5 + $0x58] sm:$0xff] %v806_v48  ;;  %v796_v1 = vmul.f32 %v735_v52, %v1339_v35  ;;  %v804_v54 = vmul.f32 %v767_v31, %v1310_v4 }
 0x4fd   :  { %v1082_v56 = vpop.f32.mrf.mxu0  ;;  %v1090_v39 = vpop.f32.mrf.mxu1 }
 0x4fe   :  { %812 = vst [vmem:[#allocation5 + $0x8] sm:$0xff] %v796_v1  ;;  %820 = vst [vmem:[#allocation5 + $0x48] sm:$0xff] %v804_v54  ;;  %v801_v6 = vmul.f32 %v1082_v56, %v1321_v18  ;;  %v809_v57 = vmul.f32 %v1090_v39, %v1300_v55 }
 0x4ff   :  { %v748_v59 = vpop.f32.mrf.mxu0  ;;  %v780_v28 = vpop.f32.mrf.mxu1 }
 0x500   :  { %817 = vst [vmem:[#allocation5 + $0x30] sm:$0xff] %v801_v6  ;;  %825 = vst [vmem:[#allocation5 + $0x70] sm:$0xff] %v809_v57  ;;  %v799_v63 = vmul.f32 %v748_v59, %v1328_v24  ;;  %v807_v61 = vmul.f32 %v780_v28, %v1298_v53 }
 0x501   :  { %v1083_v62 = vpop.f32.mrf.mxu0  ;;  %v1091_v35 = vpop.f32.mrf.mxu1 }
 0x502   :  { %815 = vst [vmem:[#allocation5 + $0x20] sm:$0xff] %v799_v63  ;;  %823 = vst [vmem:[#allocation5 + $0x60] sm:$0xff] %v807_v61  ;;  %v802_v4 = vmul.f32 %v1083_v62, %v1318_v15  ;;  %v810_v18 = vmul.f32 %v1091_v35, %v1304_v60 }
 0x503   :  { %v751_v0 = vpop.f32.mrf.mxu0  ;;  %v783_v55 = vpop.f32.mrf.mxu1 }
 0x504   :  { %818 = vst [vmem:[#allocation5 + $0x38] sm:$0xff] %v802_v4  ;;  %826 = vst [vmem:[#allocation5 + $0x78] sm:$0xff] %v810_v18  ;;  %v800_v2 = vmul.f32 %v751_v0, %v1325_v22  ;;  %v808_v24 = vmul.f32 %v783_v55, %v1302_v58 }
 0x506   :  { %816 = vst [vmem:[#allocation5 + $0x28] sm:$0xff] %v800_v2  ;;  %824 = vst [vmem:[#allocation5 + $0x68] sm:$0xff] %v808_v24 }
 0x507   :  { %1154 = shalt.err (!%p1151_p9)
}
 0x508   :  { %838 = dma.vmem_to_hbm [thread:$0]  %s833_s12, 2048, %s1450_s3, [#allocation4], %s1168_s15, %s1168_s15, %s1169_s16  }
 0x509   :  { %1165 = dma.done.wait [#allocation4], 2048  }
 0x50a   :  { %1166 = vsyncadd [#allocation4], 4294965248 }
 0x50b   :  { %842 = vsyncpa [#allocation3], 1 }
 0x50c   :  { %843 = vsyncpa [#allocation4], 1 }

</bundles_post_ra>
